<compile_context>
chip_gen: v7x
topology: tpu7x:2x2x1
jax: 0.10.0
libtpu: 0.0.40
codegen_flags: <defaults>
</compile_context>

<pallas_src>
import jax
import jax.numpy as jnp
from jax.experimental import pallas as pl
from jax.experimental.pallas import tpu as pltpu


def _round_up(x, m):
    return (x + m - 1) // m * m


def _vmem_capacity_bytes():
    """Per-core VMEM capacity; conservative v7x fallback if query fails."""
    try:
        return int(pltpu.get_tpu_info().vmem_capacity_bytes)
    except Exception:
        return 64 * 1024 * 1024


def _choose_tile_n(n, k, d, hp, in_itemsize, out_itemsize, budget_bytes):
    """Largest node-tile (multiple of 8) whose pipelined buffers fit budget."""
    # Double-buffered pipelined operands: src rows + flattened nbr rows + out rows.
    per_row = 2 * ((k * d + d) * in_itemsize + hp * out_itemsize)
    # VMEM-resident fused weight (count both pipeline buffers to be safe).
    fixed = 2 * (k + 1) * d * hp * in_itemsize
    avail = max(budget_bytes - fixed, 8 * per_row)
    tile = avail // per_row
    tile = min(tile, 2048, _round_up(n, 8))
    tile = max((tile // 8) * 8, 8)
    return int(tile)


def _sage_gcn_kernel(src_ref, nbr_ref, w_ref, out_ref):
    # src_ref: (TILE_N, D), nbr_ref: (TILE_N, K*D), w_ref: ((K+1)*D, Hp)
    x = jnp.concatenate([src_ref[...], nbr_ref[...]], axis=-1)   # (TILE_N, (K+1)*D)
    h = jnp.dot(x, w_ref[...], preferred_element_type=jnp.float32)
    out_ref[...] = jnp.maximum(h, 0.0).astype(out_ref.dtype)


def sage_gcn_forward(src, nbr, w_self, w_agg, *, tile_n=None):
    """src: (N, D), nbr: (N, K, D), w_self: (D, H), w_agg: (D, H) -> (N, H)."""
    n, d = src.shape
    _, k, _ = nbr.shape
    h = w_self.shape[1]
    out_dtype = src.dtype
    in_itemsize = jnp.dtype(src.dtype).itemsize
    out_itemsize = jnp.dtype(out_dtype).itemsize

    # --- wrapper-side weight fusion (tiny) + lane-dense H padding ----------
    hp = _round_up(h, 128)
    # [W_self ; W_agg/K stacked K times] : ((K+1)*D, Hp). Folding 1/K into the
    # weight turns the neighbor mean into part of the single MXU contraction.
    w_cat = jnp.concatenate(
        [w_self, jnp.tile(w_agg, (k, 1)) * (1.0 / k)], axis=0).astype(src.dtype)
    if hp != h:
        w_cat = jnp.pad(w_cat, ((0, 0), (0, hp - h)))

    # Flatten neighbors (contiguous merge of minor dims -> no data movement).
    nbr_flat = nbr.reshape(n, k * d)

    # --- generation-aware tile sizing over N --------------------------------
    vmem_cap = _vmem_capacity_bytes()
    if tile_n is None:
        tile_n = _choose_tile_n(n, k, d, hp, in_itemsize, out_itemsize,
                                budget_bytes=vmem_cap // 4)
    else:
        tile_n = max((int(tile_n) // 8) * 8, 8)
    np_pad = _round_up(n, tile_n)
    if np_pad != n:
        src = jnp.pad(src, ((0, np_pad - n), (0, 0)))
        nbr_flat = jnp.pad(nbr_flat, ((0, np_pad - n), (0, 0)))

    kd = k * d
    cd = (k + 1) * d
    grid = (np_pad // tile_n,)

    flops = 2 * np_pad * cd * hp
    bytes_accessed = (in_itemsize * (np_pad * d + np_pad * kd + cd * hp)
                      + out_itemsize * np_pad * hp)

    out = pl.pallas_call(
        _sage_gcn_kernel,
        out_shape=jax.ShapeDtypeStruct((np_pad, hp), out_dtype),
        grid_spec=pltpu.PrefetchScalarGridSpec(
            num_scalar_prefetch=0,
            grid=grid,
            in_specs=[
                pl.BlockSpec((tile_n, d), lambda i: (i, 0)),
                pl.BlockSpec((tile_n, kd), lambda i: (i, 0)),
                pl.BlockSpec((cd, hp), lambda i: (0, 0)),     # VMEM-resident
            ],
            out_specs=pl.BlockSpec((tile_n, hp), lambda i: (i, 0)),
        ),
        compiler_params=pltpu.CompilerParams(
            dimension_semantics=("parallel",),
            vmem_limit_bytes=int(min(vmem_cap // 2, 64 * 1024 * 1024)),
        ),
        cost_estimate=pl.CostEstimate(
            flops=flops, bytes_accessed=bytes_accessed, transcendentals=0),
    )(src, nbr_flat, w_cat)

    return out[:n, :h]


def _kaiming_uniform(key, shape):
    # Stand-in for torch.nn.init.kaiming_uniform_ on a (fan_in, fan_out) param.
    fan_in = shape[0]
    bound = jnp.sqrt(6.0 / fan_in)
    return jax.random.uniform(key, shape, jnp.float32, -bound, bound)


def reference_forward(src, nbr, w_self, w_agg):
    aggr = jnp.mean(nbr, axis=1)
    return jax.nn.relu(src @ w_self + aggr @ w_agg)


if __name__ == "__main__":
    # N nodes, K neighbors per node, input_dim D, hidden_dim H.
    N, K, D, H = 40, 4, 16, 32

    key = jax.random.PRNGKey(0)
    k_src, k_nbr, k_ws, k_wa = jax.random.split(key, 4)

    src = jax.random.normal(k_src, (N, D), dtype=jnp.float32)
    nbr = jax.random.normal(k_nbr, (N, K, D), dtype=jnp.float32)
    w_self = _kaiming_uniform(k_ws, (D, H))   # SageGCN.weight
    w_agg = _kaiming_uniform(k_wa, (D, H))    # NeighborAggregator.weight

    fwd = jax.jit(sage_gcn_forward, static_argnames=("tile_n",))
    # tile_n=16 forces a multi-step grid (Np=48, grid=3) to exercise the
    # N-tiling, N-padding and lane-padded output paths even at toy sizes.
    out = fwd(src, nbr, w_self, w_agg, tile_n=16)
    jax.block_until_ready(out)

    ref = reference_forward(src, nbr, w_self, w_agg)
    assert out.shape == (N, H)
    assert jnp.allclose(out, ref, atol=1e-4, rtol=1e-4), "mismatch vs reference"

    print("KERNEL_OK")
</pallas_src>

<mosaic_0001>
module attributes {stable_mosaic.version = 11 : i64} {
  func.func @_sage_gcn_kernel(%arg0: i32, %arg1: memref<16x16xf32, #tpu.memory_space<vmem>>, %arg2: memref<16x64xf32, #tpu.memory_space<vmem>>, %arg3: memref<80x128xf32, #tpu.memory_space<vmem>>, %arg4: memref<16x128xf32, #tpu.memory_space<vmem>>) attributes {dimension_semantics = [#tpu.dimension_semantics<parallel>], iteration_bounds = array<i64: 3>, scalar_prefetch = 0 : i64, scratch_operands = 0 : i64, tpu.core_type = #tpu.core_type<tc>, window_params = [{transform_indices = @transform_0, window_bounds = array<i64: 16, 16>}, {transform_indices = @transform_1, window_bounds = array<i64: 16, 64>}, {pipeline_mode = #tpu.pipeline_mode<synchronous>, transform_indices = @transform_2, window_bounds = array<i64: 80, 128>}, {transform_indices = @transform_3, window_bounds = array<i64: 16, 128>}]} {
    %c0 = arith.constant 0 : index
    %c0_0 = arith.constant 0 : index
    %0 = vector.load %arg1[%c0, %c0_0] : memref<16x16xf32, #tpu.memory_space<vmem>>, vector<16x16xf32>
    %c0_1 = arith.constant 0 : index
    %c0_2 = arith.constant 0 : index
    %1 = vector.load %arg2[%c0_1, %c0_2] : memref<16x64xf32, #tpu.memory_space<vmem>>, vector<16x64xf32>
    %2 = tpu.concatenate %0, %1 in 1 : vector<16x16xf32>, vector<16x64xf32> -> vector<16x80xf32>
    %c0_3 = arith.constant 0 : index
    %c0_4 = arith.constant 0 : index
    %3 = vector.load %arg3[%c0_3, %c0_4] : memref<80x128xf32, #tpu.memory_space<vmem>>, vector<80x128xf32>
    %cst = arith.constant dense<0.000000e+00> : vector<16x128xf32>
    %4 = tpu.matmul %2, %3, %cst {dimension_numbers = #tpu.dot_dimension_numbers<[1], [0], [0], [1], [0, 0, 1, 1], [], []>} : vector<16x80xf32>, vector<80x128xf32>, vector<16x128xf32> -> vector<16x128xf32>
    %cst_5 = arith.constant 0.000000e+00 : f32
    %5 = vector.broadcast %cst_5 : f32 to vector<16x128xf32>
    %6 = arith.maximumf %4, %5 : vector<16x128xf32>
    %c0_6 = arith.constant 0 : index
    %c0_7 = arith.constant 0 : index
    %7 = vector.load %arg4[%c0_6, %c0_7] : memref<16x128xf32, #tpu.memory_space<vmem>>, vector<16x128xf32>
    tpu.vector_store %arg4[%c0_6, %c0_7], %6 {strides = array<i32>} : memref<16x128xf32, #tpu.memory_space<vmem>>, vector<16x128xf32>,
    return
  }
  func.func @transform_0(%arg0: i32) -> (i32, i32) {
    %c0_i32 = arith.constant 0 : i32
    %c0_i32_0 = arith.constant 0 : i32
    return %arg0, %c0_i32 : i32, i32
  }
  func.func @transform_1(%arg0: i32) -> (i32, i32) {
    %c0_i32 = arith.constant 0 : i32
    %c0_i32_0 = arith.constant 0 : i32
    return %arg0, %c0_i32 : i32, i32
  }
  func.func @transform_2(%arg0: i32) -> (i32, i32) {
    %c0_i32 = arith.constant 0 : i32
    %c0_i32_0 = arith.constant 0 : i32
    %c0_i32_1 = arith.constant 0 : i32
    return %c0_i32, %c0_i32_0 : i32, i32
  }
  func.func @transform_3(%arg0: i32) -> (i32, i32) {
    %c0_i32 = arith.constant 0 : i32
    %c0_i32_0 = arith.constant 0 : i32
    return %arg0, %c0_i32 : i32, i32
  }
}

</mosaic_0001>

<bundles_post_ra>
// kernel: sage_gcn_forward.1
= control target key start
LH: loop header
LB: loop body
LE: loop exit
PB: predicated region body
PF: predicated region fallthrough
CT: control target
= control target key end

     0   :  { %s483_s12 = smov 0   ;;  %s538_s0 = inlined_call_operand.vmem [shape: f32[48,16], index: 0, kind: input, shape index: {}]   ;;  %s539_s1 = inlined_call_operand.vmem [shape: f32[48,64], index: 1, kind: input, shape index: {}]   ;;  %s540_s2 = inlined_call_operand.vmem [shape: f32[80,128], index: 2, kind: input, shape index: {}]   ;;  %s541_s3 = inlined_call_operand.vmem [shape: f32[48,128], index: 3, kind: output, shape index: {}]  }
   0x1 LB: > { %s375_s13 = sadd.s32 4294967295, %s460_s12   ;;  %p379_p0 = scmp.ge.s32.totalorder %s460_s12, 1  ;;  %s460_s12 = sphi %s483_s12, %s13_s12  }
   0x2   : > { %p149_p1 = scmp.lt.s32.totalorder %s460_s12, 4 }
   0x4   : > { %p150_p2 = pnand %p379_p0, %p149_p1 }
   0x5   : > { %s380_s14 = sshll.u32 (!%p150_p2), %s375_s13, 1  ;;  %v211_v0 = vld [vmem:[%s540_s2] sm:$0xff] (!%p150_p2)  ;;  %v212_v1 = vld [vmem:[%s540_s2 + $0x8] sm:$0xff] (!%p150_p2)  ;;  %v213_v2 = vld [vmem:[%s540_s2 + $0x10] sm:$0xff] (!%p150_p2)  ;;  %s462_s8 = smov (!%p150_p2), 16   ;;  %vm208_vm0 = vcmask (!%p150_p2), 130048  }
   0x6   : > { %153 = sbr.rel (%p150_p2) target bundleno = 353 (0x161), region = 32  ;;  %p179_p3 = scmp.lt.s32.totalorder (!%p150_p2), %s380_s14, 5  ;;  %v425_v3 = vpack.c.bf16 (!%p150_p2), %v212_v1, %v211_v0  ;;  %v214_v4 = vld [vmem:[%s540_s2 + $0x18] sm:$0xff] (!%p150_p2)  ;;  %v215_v6 = vld [vmem:[%s540_s2 + $0x20] sm:$0xff] (!%p150_p2)  ;;  %v216_v7 = vld [vmem:[%s540_s2 + $0x28] sm:$0xff] (!%p150_p2)  ;;  %vm221_vm1 = vcmask (!%p150_p2), 654336  }
   0x7   : > { %v429_v5 = vpack.c.bf16 (!%p150_p2), %v214_v4, %v213_v2  ;;  %v433_v8 = vpack.c.bf16 (!%p150_p2), %v216_v7, %v215_v6  ;;  %v217_v9 = vld [vmem:[%s540_s2 + $0x30] sm:$0xff] (!%p150_p2)  ;;  %v218_v10 = vld [vmem:[%s540_s2 + $0x38] sm:$0xff] (!%p150_p2)  ;;  %v219_v14 = vld [vmem:[%s540_s2 + $0x40] sm:$0xff] (!%p150_p2) }
   0x8   : > { %426 = vmatprep.subr.bf16.mxu0 (!%p150_p2), %v425_v3  ;;  %v437_v13 = vpack.c.bf16 (!%p150_p2), %v218_v10, %v217_v9  ;;  %v220_v15 = vld [vmem:[%s540_s2 + $0x48] sm:$0xff] (!%p150_p2) }
   0x9   : > { %428 = vmatpush3.bf16.msra.mxu0 (!%p150_p2), %v425_v3  ;;  %v441_v16 = vpack.c.bf16 (!%p150_p2), %v220_v15, %v219_v14 }
   0xa   : > { %430 = vmatprep.subr.bf16.mxu0 (!%p150_p2), %v429_v5 }
   0xd   : > { %s543_s14 = smov (!%p179_p3, %s380_s14), 5  ;;  %432 = vmatpush3.bf16.msra.mxu0 %v429_v5 }
   0xe   : > { %s509_s27 = sshll.u32 %s543_s14, 3  ;;  %434 = vmatprep.subr.bf16.mxu0 %v433_v8 }
   0xf   : > { %s188_s30 = scalar_lea.vmem %s539_s1, %s509_s27  ;;  %s182_s16 = scalar_lea.vmem %s538_s0, %s509_s27 }
  0x10   : > { %v198_v11 = vld [vmem:[%s188_s30] sm:$0xff]  ;;  %v199_v12 = vld [vmem:[%s188_s30 + $0x8] sm:$0xff]  ;;  %s194_s19 = scalar_lea.vmem %s541_s3, %s509_s27 }
  0x11   : > { %202 = vrot.lane.b32.xlu0 %v198_v11, %s462_s8  ;;  %436 = vmatpush3.bf16.msra.mxu0 %v433_v8  ;;  %v196_v17 = vld [vmem:[%s182_s16] sm:$0xff]  ;;  %v197_v20 = vld [vmem:[%s182_s16 + $0x8] sm:$0xff] }
  0x12   : > { %438 = vmatprep.subr.bf16.mxu0 %v437_v13 }
  0x15   : > { %204 = vrot.lane.b32.xlu0 %v199_v12, %s462_s8  ;;  %440 = vmatpush3.bf16.msra.mxu0 %v437_v13 }
  0x16   : > { %442 = vmatprep.subr.bf16.mxu0 %v441_v16 }
  0x19   : > { %444 = vmatpush3.bf16.msra.mxu0 %v441_v16 }
  0x83   : > { %v203_v18 = vpop.permute.xlu0 %202 }
  0x84   : > { %v209_v19 = vsel %vm208_vm0, %v196_v17, %v203_v18 }
  0x85   : > { %422 = vmatprep.mubr.msk.f32.mxu0 %vm221_vm1, %v209_v19 }
  0x87   : > { %v205_v21 = vpop.permute.xlu0 %204 }
  0x88   : > { %v210_v22 = vsel %vm208_vm0, %v197_v20, %v205_v21 }
  0x89   : > { %423 = vmatmul.mubr.msk.f32.vlgmr.msra.gmra.mrb[0].mxu0 %vm221_vm1, %v210_v22 }
 0x15c   : > { %v424_v23 = vpop.f32.mrb[0].mxu0 }
 0x15d   : > { %v294_v24 = vpop.f32.mrb[1].mxu0  ;;  %v304_v26 = vmax.f32 %v424_v23, 0.0 }
 0x15e   : > { %v303_v25 = vmax.f32 %v294_v24, 0.0 }
 0x15f   : > { %306 = vst [vmem:[%s194_s19 + $0x8] sm:$0xff] %v304_v26 }
 0x160   : > { %305 = vst [vmem:[%s194_s19] sm:$0xff] %v303_v25 }
 0x161 PF: > { %s13_s12 = sadd.s32 1, %s460_s12  }
 0x162   : > { %p10_p4 = scmp.ge.s32.totalorder %s13_s12, 5  }
 0x164   :  { %12 = sbr.rel (!%p10_p4) target bundleno = 1 (0x1), region = 65 }

</bundles_post_ra>
